<compile_context>
chip_gen: v7x
topology: tpu7x:2x2x1
jax: 0.10.0
libtpu: 0.0.40
codegen_flags: <defaults>
</compile_context>

<pallas_src>
import functools

import jax
import jax.numpy as jnp
from jax import lax
from jax.experimental import pallas as pl
from jax.experimental.pallas import tpu as pltpu


def _round_up(x, m):
    return (x + m - 1) // m * m


def _nw_kernel(c_ref, q_ref, k_ref, v_ref, o_ref, m_sc, den_sc, num_sc,
               *, k_valid, tk, mask_k):
    # c_ref:  SMEM (1,)      precomputed -0.5 * w * w
    # q_ref:  VMEM (tq, 1)   queries (sublane column)
    # k_ref:  VMEM (tq, tk)  keys, native (Q, K) layout
    # v_ref:  VMEM (tq, tk)  values, native (Q, K) layout
    # o_ref:  VMEM (tq, 1)   output column (resident across the K grid axis)
    # m_sc/den_sc/num_sc: VMEM (tq, 1) online-softmax accumulators
    kk = pl.program_id(1)

    @pl.when(kk == 0)
    def _():
        m_sc[...] = jnp.full_like(m_sc, -jnp.inf)
        den_sc[...] = jnp.zeros_like(den_sc)
        num_sc[...] = jnp.zeros_like(num_sc)

    c = c_ref[0]
    q = q_ref[...]                     # (tq, 1)
    k = k_ref[...]                     # (tq, tk)
    v = v_ref[...]                     # (tq, tk)

    diff = q - k                       # lane broadcast -> (tq, tk)
    scores = c * diff * diff           # == -((q - k) * w)**2 / 2

    if mask_k:
        # Mask padded key lanes (static K known at trace time); exp(-inf) == 0.
        lane = lax.broadcasted_iota(jnp.int32, scores.shape, 1) + kk * tk
        scores = jnp.where(lane < k_valid, scores, -jnp.inf)

    # Online (streaming) softmax over the K chunks; normalization fused into the
    # weighted reduction — no full-K attention tile is ever materialized.
    row_max = jnp.max(scores, axis=-1, keepdims=True)        # (tq, 1)
    m_new = jnp.maximum(m_sc[...], row_max)
    alpha = jnp.exp(m_sc[...] - m_new)
    e = jnp.exp(scores - m_new)                              # (tq, tk), in vregs

    den_sc[...] = alpha * den_sc[...] + jnp.sum(e, axis=-1, keepdims=True)
    num_sc[...] = alpha * num_sc[...] + jnp.sum(e * v, axis=-1, keepdims=True)
    m_sc[...] = m_new

    @pl.when(kk == pl.num_programs(1) - 1)
    def _():
        # Exact division (approx reciprocal would not meet 1e-5 tolerance).
        o_ref[...] = num_sc[...] / den_sc[...]


def nw_kernel_regression(w, queries, keys, values, *, tq_max=256, tk_max=512):
    """w: (1,), queries: (Q,), keys/values: (Q, K) -> (Q,) f32."""
    Q, K = keys.shape

    queries = queries.astype(jnp.float32)
    keys = keys.astype(jnp.float32)
    values = values.astype(jnp.float32)
    w32 = w.astype(jnp.float32)
    c = (-0.5 * w32 * w32).reshape(1)                        # SMEM scalar

    # Query tile on sublanes (pad to x8); K tile on lanes (pad to x128).
    tq = min(tq_max, _round_up(Q, 8))
    q_pad = _round_up(Q, tq)
    tk = min(tk_max, _round_up(K, 128))
    k_pad = _round_up(K, tk)

    q_col = jnp.pad(queries, (0, q_pad - Q)).reshape(q_pad, 1)
    k_mat = jnp.pad(keys, ((0, q_pad - Q), (0, k_pad - K)))
    v_mat = jnp.pad(values, ((0, q_pad - Q), (0, k_pad - K)))

    grid = (q_pad // tq, k_pad // tk)

    kernel = functools.partial(
        _nw_kernel, k_valid=K, tk=tk, mask_k=(k_pad != K))

    cost = pl.CostEstimate(
        flops=8 * q_pad * k_pad,
        transcendentals=q_pad * k_pad,
        bytes_accessed=(2 * q_pad * k_pad + 2 * q_pad) * 4,
    )

    out = pl.pallas_call(
        kernel,
        out_shape=jax.ShapeDtypeStruct((q_pad, 1), jnp.float32),
        grid=grid,
        in_specs=[
            pl.BlockSpec(memory_space=pltpu.MemorySpace.SMEM),   # c (scalar)
            pl.BlockSpec((tq, 1), lambda i, kk: (i, 0)),         # queries column
            pl.BlockSpec((tq, tk), lambda i, kk: (i, kk)),       # keys (native)
            pl.BlockSpec((tq, tk), lambda i, kk: (i, kk)),       # values (native)
        ],
        out_specs=pl.BlockSpec((tq, 1), lambda i, kk: (i, 0)),
        scratch_shapes=[
            pltpu.VMEM((tq, 1), jnp.float32),    # running max
            pltpu.VMEM((tq, 1), jnp.float32),    # running denominator
            pltpu.VMEM((tq, 1), jnp.float32),    # running numerator
        ],
        compiler_params=pltpu.CompilerParams(
            dimension_semantics=("parallel", "arbitrary"),
            vmem_limit_bytes=32 * 1024 * 1024,
        ),
        cost_estimate=cost,
    )(c, q_col, k_mat, v_mat)

    return out[:Q, 0]


def _f(x):
    return 2.0 * jnp.sin(x) + x ** 0.8


def _reference(w, queries, keys, values):
    q = jnp.repeat(queries, keys.shape[1]).reshape(-1, keys.shape[1])
    attn = jax.nn.softmax(-(((q - keys) * w[0]) ** 2) / 2.0, axis=1)
    return jnp.einsum("qk,qk->q", attn, values)


if __name__ == "__main__":
    key = jax.random.PRNGKey(0)
    k1, k2 = jax.random.split(key)

    n_train = 50
    x_train = jnp.sort(jax.random.uniform(k1, (n_train,)) * 5.0)
    y_train = _f(x_train) + 0.5 * jax.random.normal(k2, (n_train,))

    x_test = jnp.arange(0.0, 5.0, 0.1, dtype=jnp.float32)     # (50,)
    n_test = x_test.shape[0]

    keys_mat = jnp.tile(x_train[None, :], (n_test, 1))        # (50, 50)
    values_mat = jnp.tile(y_train[None, :], (n_test, 1))      # (50, 50)

    # deterministic parameter init (nn.Parameter(torch.rand((1,))))
    w = jax.random.uniform(jax.random.PRNGKey(42), (1,), dtype=jnp.float32)

    out = nw_kernel_regression(w, x_test, keys_mat, values_mat)
    out = jax.block_until_ready(out)

    ref = _reference(w, x_test, keys_mat, values_mat)
    assert out.shape == (n_test,)
    assert jnp.allclose(out, ref, atol=1e-5, rtol=1e-5)

    print("KERNEL_OK")
</pallas_src>

<mosaic_0001>
module attributes {stable_mosaic.version = 11 : i64} {
  func.func @_nw_kernel(%arg0: i32, %arg1: i32, %arg2: memref<1xf32, #tpu.memory_space<smem>>, %arg3: memref<56x1xf32, #tpu.memory_space<vmem>>, %arg4: memref<56x128xf32, #tpu.memory_space<vmem>>, %arg5: memref<56x128xf32, #tpu.memory_space<vmem>>, %arg6: memref<56x1xf32, #tpu.memory_space<vmem>>, %arg7: memref<56x1xf32, #tpu.memory_space<vmem>>, %arg8: memref<56x1xf32, #tpu.memory_space<vmem>>, %arg9: memref<56x1xf32, #tpu.memory_space<vmem>>) attributes {dimension_semantics = [#tpu.dimension_semantics<parallel>, #tpu.dimension_semantics<arbitrary>], iteration_bounds = array<i64: 1, 1>, scalar_prefetch = 0 : i64, scratch_operands = 3 : i64, tpu.core_type = #tpu.core_type<tc>, window_params = [{transform_indices = @transform_0, window_bounds = array<i64: 1>}, {transform_indices = @transform_1, window_bounds = array<i64: 56, 1>}, {transform_indices = @transform_2, window_bounds = array<i64: 56, 128>}, {transform_indices = @transform_3, window_bounds = array<i64: 56, 128>}, {transform_indices = @transform_4, window_bounds = array<i64: 56, 1>}]} {
    %c0_i32 = arith.constant 0 : i32
    %0 = arith.cmpi eq, %arg1, %c0_i32 : i32
    %1 = arith.extui %0 : i1 to i32
    %c0_i32_0 = arith.constant 0 : i32
    %2 = arith.cmpi ne, %1, %c0_i32_0 : i32
    scf.if %2 {
      %cst_26 = arith.constant 0xFF800000 : f32
      %47 = vector.broadcast %cst_26 : f32 to vector<56x1xf32>
      %c0_27 = arith.constant 0 : index
      %c0_28 = arith.constant 0 : index
      %48 = vector.load %arg7[%c0_27, %c0_28] : memref<56x1xf32, #tpu.memory_space<vmem>>, vector<56x1xf32>
      tpu.vector_store %arg7[%c0_27, %c0_28], %47 {strides = array<i32>} : memref<56x1xf32, #tpu.memory_space<vmem>>, vector<56x1xf32>,
      %cst_29 = arith.constant 0.000000e+00 : f32
      %49 = vector.broadcast %cst_29 : f32 to vector<56x1xf32>
      %c0_30 = arith.constant 0 : index
      %c0_31 = arith.constant 0 : index
      %50 = vector.load %arg8[%c0_30, %c0_31] : memref<56x1xf32, #tpu.memory_space<vmem>>, vector<56x1xf32>
      tpu.vector_store %arg8[%c0_30, %c0_31], %49 {strides = array<i32>} : memref<56x1xf32, #tpu.memory_space<vmem>>, vector<56x1xf32>,
      %cst_32 = arith.constant 0.000000e+00 : f32
      %51 = vector.broadcast %cst_32 : f32 to vector<56x1xf32>
      %c0_33 = arith.constant 0 : index
      %c0_34 = arith.constant 0 : index
      %52 = vector.load %arg9[%c0_33, %c0_34] : memref<56x1xf32, #tpu.memory_space<vmem>>, vector<56x1xf32>
      tpu.vector_store %arg9[%c0_33, %c0_34], %51 {strides = array<i32>} : memref<56x1xf32, #tpu.memory_space<vmem>>, vector<56x1xf32>,
    } else {
    }
    %c0 = arith.constant 0 : index
    %3 = memref.load %arg2[%c0] : memref<1xf32, #tpu.memory_space<smem>>
    %c0_1 = arith.constant 0 : index
    %c0_2 = arith.constant 0 : index
    %4 = vector.load %arg3[%c0_1, %c0_2] : memref<56x1xf32, #tpu.memory_space<vmem>>, vector<56x1xf32>
    %c0_3 = arith.constant 0 : index
    %c0_4 = arith.constant 0 : index
    %5 = vector.load %arg4[%c0_3, %c0_4] : memref<56x128xf32, #tpu.memory_space<vmem>>, vector<56x128xf32>
    %c0_5 = arith.constant 0 : index
    %c0_6 = arith.constant 0 : index
    %6 = vector.load %arg5[%c0_5, %c0_6] : memref<56x128xf32, #tpu.memory_space<vmem>>, vector<56x128xf32>
    %7 = vector.broadcast %4 : vector<56x1xf32> to vector<56x128xf32>
    %8 = arith.subf %7, %5 : vector<56x128xf32>
    %9 = vector.broadcast %3 : f32 to vector<56x128xf32>
    %10 = arith.mulf %9, %8 : vector<56x128xf32>
    %11 = arith.mulf %10, %8 : vector<56x128xf32>
    %12 = tpu.iota {dimensions = array<i32: 1>} : vector<56x128xi32>
    %c128_i32 = arith.constant 128 : i32
    %13 = arith.muli %arg1, %c128_i32 : i32
    %14 = vector.broadcast %13 : i32 to vector<56x128xi32>
    %15 = arith.addi %12, %14 : vector<56x128xi32>
    %c50_i32 = arith.constant 50 : i32
    %16 = vector.broadcast %c50_i32 : i32 to vector<56x128xi32>
    %17 = arith.cmpi slt, %15, %16 : vector<56x128xi32>
    %cst = arith.constant 0xFF800000 : f32
    %18 = vector.broadcast %cst : f32 to vector<56x128xf32>
    %19 = arith.select %17, %11, %18 : vector<56x128xi1>, vector<56x128xf32>
    %cst_7 = arith.constant dense<0xFF800000> : vector<56xf32>
    %20 = vector.multi_reduction <maximumf>, %19, %cst_7 [1] : vector<56x128xf32> to vector<56xf32>
    %21 = vector.shape_cast %20 : vector<56xf32> to vector<56x1xf32>
    %c0_8 = arith.constant 0 : index
    %c0_9 = arith.constant 0 : index
    %22 = vector.load %arg7[%c0_8, %c0_9] : memref<56x1xf32, #tpu.memory_space<vmem>>, vector<56x1xf32>
    %23 = arith.maximumf %22, %21 : vector<56x1xf32>
    %c0_10 = arith.constant 0 : index
    %c0_11 = arith.constant 0 : index
    %24 = vector.load %arg7[%c0_10, %c0_11] : memref<56x1xf32, #tpu.memory_space<vmem>>, vector<56x1xf32>
    %25 = arith.subf %24, %23 : vector<56x1xf32>
    %26 = math.exp %25 : vector<56x1xf32>
    %27 = vector.broadcast %23 : vector<56x1xf32> to vector<56x128xf32>
    %28 = arith.subf %19, %27 : vector<56x128xf32>
    %29 = math.exp %28 : vector<56x128xf32>
    %c0_12 = arith.constant 0 : index
    %c0_13 = arith.constant 0 : index
    %30 = vector.load %arg8[%c0_12, %c0_13] : memref<56x1xf32, #tpu.memory_space<vmem>>, vector<56x1xf32>
    %31 = arith.mulf %26, %30 : vector<56x1xf32>
    %cst_14 = arith.constant dense<0.000000e+00> : vector<56xf32>
    %32 = vector.multi_reduction <add>, %29, %cst_14 [1] : vector<56x128xf32> to vector<56xf32>
    %33 = vector.shape_cast %32 : vector<56xf32> to vector<56x1xf32>
    %34 = arith.addf %31, %33 : vector<56x1xf32>
    %c0_15 = arith.constant 0 : index
    %c0_16 = arith.constant 0 : index
    %35 = vector.load %arg8[%c0_15, %c0_16] : memref<56x1xf32, #tpu.memory_space<vmem>>, vector<56x1xf32>
    tpu.vector_store %arg8[%c0_15, %c0_16], %34 {strides = array<i32>} : memref<56x1xf32, #tpu.memory_space<vmem>>, vector<56x1xf32>,
    %c0_17 = arith.constant 0 : index
    %c0_18 = arith.constant 0 : index
    %36 = vector.load %arg9[%c0_17, %c0_18] : memref<56x1xf32, #tpu.memory_space<vmem>>, vector<56x1xf32>
    %37 = arith.mulf %26, %36 : vector<56x1xf32>
    %38 = arith.mulf %29, %6 : vector<56x128xf32>
    %cst_19 = arith.constant dense<0.000000e+00> : vector<56xf32>
    %39 = vector.multi_reduction <add>, %38, %cst_19 [1] : vector<56x128xf32> to vector<56xf32>
    %40 = vector.shape_cast %39 : vector<56xf32> to vector<56x1xf32>
    %41 = arith.addf %37, %40 : vector<56x1xf32>
    %c0_20 = arith.constant 0 : index
    %c0_21 = arith.constant 0 : index
    %42 = vector.load %arg9[%c0_20, %c0_21] : memref<56x1xf32, #tpu.memory_space<vmem>>, vector<56x1xf32>
    tpu.vector_store %arg9[%c0_20, %c0_21], %41 {strides = array<i32>} : memref<56x1xf32, #tpu.memory_space<vmem>>, vector<56x1xf32>,
    %c0_22 = arith.constant 0 : index
    %c0_23 = arith.constant 0 : index
    %43 = vector.load %arg7[%c0_22, %c0_23] : memref<56x1xf32, #tpu.memory_space<vmem>>, vector<56x1xf32>
    tpu.vector_store %arg7[%c0_22, %c0_23], %23 {strides = array<i32>} : memref<56x1xf32, #tpu.memory_space<vmem>>, vector<56x1xf32>,
    %c0_i32_24 = arith.constant 0 : i32
    %44 = arith.cmpi eq, %arg1, %c0_i32_24 : i32
    %45 = arith.extui %44 : i1 to i32
    %c0_i32_25 = arith.constant 0 : i32
    %46 = arith.cmpi ne, %45, %c0_i32_25 : i32
    scf.if %46 {
      %c0_26 = arith.constant 0 : index
      %c0_27 = arith.constant 0 : index
      %47 = vector.load %arg9[%c0_26, %c0_27] : memref<56x1xf32, #tpu.memory_space<vmem>>, vector<56x1xf32>
      %c0_28 = arith.constant 0 : index
      %c0_29 = arith.constant 0 : index
      %48 = vector.load %arg8[%c0_28, %c0_29] : memref<56x1xf32, #tpu.memory_space<vmem>>, vector<56x1xf32>
      %49 = arith.divf %47, %48 : vector<56x1xf32>
      %c0_30 = arith.constant 0 : index
      %c0_31 = arith.constant 0 : index
      %50 = vector.load %arg6[%c0_30, %c0_31] : memref<56x1xf32, #tpu.memory_space<vmem>>, vector<56x1xf32>
      tpu.vector_store %arg6[%c0_30, %c0_31], %49 {strides = array<i32>} : memref<56x1xf32, #tpu.memory_space<vmem>>, vector<56x1xf32>,
    } else {
    }
    return
  }
  func.func @transform_0(%arg0: i32, %arg1: i32) -> i32 {
    %c0_i32 = arith.constant 0 : i32
    %c0_i32_0 = arith.constant 0 : i32
    return %c0_i32 : i32
  }
  func.func @transform_1(%arg0: i32, %arg1: i32) -> (i32, i32) {
    %c0_i32 = arith.constant 0 : i32
    %c0_i32_0 = arith.constant 0 : i32
    return %arg0, %c0_i32 : i32, i32
  }
  func.func @transform_2(%arg0: i32, %arg1: i32) -> (i32, i32) {
    %c0_i32 = arith.constant 0 : i32
    return %arg0, %arg1 : i32, i32
  }
  func.func @transform_3(%arg0: i32, %arg1: i32) -> (i32, i32) {
    %c0_i32 = arith.constant 0 : i32
    return %arg0, %arg1 : i32, i32
  }
  func.func @transform_4(%arg0: i32, %arg1: i32) -> (i32, i32) {
    %c0_i32 = arith.constant 0 : i32
    %c0_i32_0 = arith.constant 0 : i32
    return %arg0, %c0_i32 : i32, i32
  }
}

</mosaic_0001>

<bundles_post_ra>
// kernel: tpu_custom_call.1
= control target key start
LH: loop header
LB: loop body
LE: loop exit
PB: predicated region body
PF: predicated region fallthrough
CT: control target
= control target key end

     0   :  { %10 = vsyncpa [#allocation7], 0  ;;  %s471_s15 = smov [#allocation6]   ;;  %s752_s0 = inlined_call_operand.<no memory space> [shape: f32[1], index: 0, kind: input, shape index: {}]   ;;  %s753_s1 = inlined_call_operand.vmem [shape: f32[56,1], index: 1, kind: input, shape index: {}]   ;;  %s754_s2 = inlined_call_operand.vmem [shape: f32[56,128], index: 2, kind: input, shape index: {}]   ;;  %s755_s3 = inlined_call_operand.hbm [shape: f32[56,128], index: 3, kind: input, shape index: {}]   ;;  %s756_s4 = inlined_call_operand.vmem [shape: f32[56,1], index: 4, kind: output, shape index: {}]  }
   0x1   :  { %s22_s16 = sshll.u32 %s471_s15, 4  ;;  %s447_s19 = scalar_lea.hbm %s755_s3, 896  ;;  %s23_s16 = int_to_ptr.vmem [resolvable:$true] %s22_s16 }
   0x2   :  { %p448_p0 = scmp.ne.s32.totalorder %s755_s3, %s447_s19  ;;  %p451_p1 = scmp.lt.u32.totalorder %s447_s19, %s755_s3 }
   0x4   :  { %p453_p2 = pnand %p451_p1, %p448_p0 }
   0x6   :  { %456 = shalt.err (!%p453_p2)
}
   0x7   :  { %s457_s24 = scalar_lea.vmem %s23_s16, 896  ;;  %p462_p4 = scmp.lt.s32.totalorder %s23_s16, %s23_s16 }
   0x8   :  { %p458_p3 = scmp.ne.s32.totalorder %s23_s16, %s457_s24  ;;  %p463_p5 = scmp.lt.s32.totalorder %s457_s24, %s457_s24 }
   0xa   :  { %p464_p6 = por %p463_p5, %p462_p4 }
   0xc   :  { %p465_p7 = pnand %p464_p6, %p458_p3 }
   0xe   :  { %468 = shalt.err (!%p465_p7)
}
   0xf   :  { %s472_s25 = smov 128   ;;  %s473_s26 = smov 8  }
  0x10   :  { %28 = dma.hbm_to_vmem [thread:$0]  %s755_s3, 896, %s23_s16, [#allocation7], %s472_s25, %s472_s25, %s473_s26  }
  0x11   :  { %469 = dma.done.wait [#allocation7], 896  }
  0x12   :  { %470 = vsyncadd [#allocation7], 4294966400  ;;  %v474_v0 = vmov 0   ;;  %v61_v1 = vld [vmem:[%s753_s1 + $0x10] sm:$0xff]  ;;  %v59_v2 = vld [vmem:[%s753_s1] sm:$0xff]  ;;  %vm36_vm0 = vcmask 7168   ;;  %v137_v9 = vlaneseq  ;;  %v122_v12 = vstv %s752_s0 }
  0x13   :  { %404 = vset.pattern.permute.xlu1 %v474_v0  ;;  %403 = vset.pattern.permute.xlu0 %v474_v0  ;;  %v62_v3 = vld [vmem:[%s753_s1 + $0x18] sm:$0xff]  ;;  %v60_v4 = vld [vmem:[%s753_s1 + $0x8] sm:$0xff]  ;;  %v63_v6 = vld [vmem:[%s753_s1 + $0x20] sm:$0xff]  ;;  %v475_v8 = vmov -inf   ;;  %v476_v54 = vmov 0.0  }
  0x14   :  { %92 = vperm.xlu1 %404, %v61_v1   ;;  %82 = vperm.xlu0 %403, %v59_v2   ;;  %v64_v5 = vld [vmem:[%s753_s1 + $0x28] sm:$0xff]  ;;  %v65_v7 = vld [vmem:[%s753_s1 + $0x30] sm:$0xff]  ;;  %37 = vst.msk [vmem:[#allocation2] sm:$0xff] %vm36_vm0, %v475_v8  ;;  %38 = vst.msk [vmem:[#allocation2 + $0x8] sm:$0xff] %vm36_vm0, %v475_v8  ;;  %v138_v15 = vand.u32 127, %v137_v9 }
  0x15   :  { %39 = vst.msk [vmem:[#allocation2 + $0x10] sm:$0xff] %vm36_vm0, %v475_v8  ;;  %40 = vst.msk [vmem:[#allocation2 + $0x18] sm:$0xff] %vm36_vm0, %v475_v8  ;;  %v66_v10 = vld [vmem:[%s754_s2] sm:$0xff]  ;;  %v68_v11 = vld [vmem:[%s754_s2 + $0x10] sm:$0xff] }
  0x16   :  { %41 = vst.msk [vmem:[#allocation2 + $0x20] sm:$0xff] %vm36_vm0, %v475_v8  ;;  %42 = vst.msk [vmem:[#allocation2 + $0x28] sm:$0xff] %vm36_vm0, %v475_v8  ;;  %v69_v18 = vld [vmem:[%s754_s2 + $0x18] sm:$0xff]  ;;  %v67_v19 = vld [vmem:[%s754_s2 + $0x8] sm:$0xff]  ;;  %vm142_vm1 = vcmp.lt.s32.totalorder %v138_v15, 50 }
  0x17   :  { %43 = vst.msk [vmem:[#allocation2 + $0x30] sm:$0xff] %vm36_vm0, %v475_v8  ;;  %v71_v27 = vld [vmem:[%s754_s2 + $0x28] sm:$0xff]  ;;  %v70_v28 = vld [vmem:[%s754_s2 + $0x20] sm:$0xff]  ;;  %v72_v38 = vld [vmem:[%s754_s2 + $0x30] sm:$0xff] }
  0x18   :  { %97 = vperm.xlu1 %404, %v62_v3   ;;  %87 = vperm.xlu0 %403, %v60_v4   ;;  %44 = vst.msk [vmem:[#allocation3] sm:$0xff] %vm36_vm0, %v476_v54  ;;  %45 = vst.msk [vmem:[#allocation3 + $0x8] sm:$0xff] %vm36_vm0, %v476_v54 }
  0x19   :  { %46 = vst.msk [vmem:[#allocation3 + $0x10] sm:$0xff] %vm36_vm0, %v476_v54  ;;  %47 = vst.msk [vmem:[#allocation3 + $0x18] sm:$0xff] %vm36_vm0, %v476_v54 }
  0x1a   :  { %48 = vst.msk [vmem:[#allocation3 + $0x20] sm:$0xff] %vm36_vm0, %v476_v54  ;;  %49 = vst.msk [vmem:[#allocation3 + $0x28] sm:$0xff] %vm36_vm0, %v476_v54 }
  0x1b   :  { %50 = vst.msk [vmem:[#allocation3 + $0x30] sm:$0xff] %vm36_vm0, %v476_v54  ;;  %51 = vst.msk [vmem:[#allocation4] sm:$0xff] %vm36_vm0, %v476_v54  ;;  %v608_v55 = vld [vmem:[#allocation2] sm:$0xff]  ;;  %v615_v59 = vld [vmem:[#allocation2 + $0x8] sm:$0xff] }
  0x1c   :  { %107 = vperm.xlu1 %404, %v64_v5   ;;  %102 = vperm.xlu0 %403, %v63_v6   ;;  %52 = vst.msk [vmem:[#allocation4 + $0x8] sm:$0xff] %vm36_vm0, %v476_v54  ;;  %53 = vst.msk [vmem:[#allocation4 + $0x10] sm:$0xff] %vm36_vm0, %v476_v54  ;;  %v613_v58 = vld [vmem:[#allocation2 + $0x18] sm:$0xff]  ;;  %v630_v2 = vld [vmem:[#allocation2 + $0x10] sm:$0xff] }
  0x1d   :  { %54 = vst.msk [vmem:[#allocation4 + $0x18] sm:$0xff] %vm36_vm0, %v476_v54  ;;  %55 = vst.msk [vmem:[#allocation4 + $0x20] sm:$0xff] %vm36_vm0, %v476_v54  ;;  %v628_v1 = vld [vmem:[#allocation2 + $0x28] sm:$0xff]  ;;  %v647_v9 = vld [vmem:[#allocation2 + $0x20] sm:$0xff] }
  0x1e   :  { %56 = vst.msk [vmem:[#allocation4 + $0x28] sm:$0xff] %vm36_vm0, %v476_v54  ;;  %57 = vst.msk [vmem:[#allocation4 + $0x30] sm:$0xff] %vm36_vm0, %v476_v54 }
  0x20   :  { %112 = vperm.xlu0 %403, %v65_v7  }
  0x93   :  { %v93_v13 = vpop.permute.xlu1 %92  ;;  %v83_v14 = vpop.permute.xlu0 %82 }
  0x94   :  { %v115_v16 = vsub.f32 %v83_v14, %v66_v10  ;;  %v117_v17 = vsub.f32 %v93_v13, %v68_v11  ;;  %v661_v14 = vld [vmem:[#allocation2 + $0x30] sm:$0xff] }
  0x96   :  { %v123_v20 = vmul.f32 %v122_v12, %v115_v16  ;;  %v125_v26 = vmul.f32 %v122_v12, %v117_v17 }
  0x97   :  { %v98_v21 = vpop.permute.xlu1 %97  ;;  %v88_v22 = vpop.permute.xlu0 %87 }
  0x98   :  { %v118_v23 = vsub.f32 %v98_v21, %v69_v18  ;;  %v116_v24 = vsub.f32 %v88_v22, %v67_v19  ;;  %v130_v25 = vmul.f32 %v123_v20, %v115_v16  ;;  %v132_v39 = vmul.f32 %v125_v26, %v117_v17 }
  0x9a   :  { %v126_v29 = vmul.f32 %v122_v12, %v118_v23  ;;  %v124_v30 = vmul.f32 %v122_v12, %v116_v24  ;;  %v564_v31 = vsel %vm142_vm1, %v130_v25, -inf  ;;  %v582_v49 = vsel %vm142_vm1, %v132_v39, -inf }
  0x9b   :  { %v108_v32 = vpop.permute.xlu1 %107  ;;  %150 = vmax.xlane.f32.xlu1 %v564_v31  ;;  %v103_v33 = vpop.permute.xlu0 %102 }
  0x9c   :  { %v120_v34 = vsub.f32 %v108_v32, %v71_v27  ;;  %v119_v35 = vsub.f32 %v103_v33, %v70_v28  ;;  %v133_v36 = vmul.f32 %v126_v29, %v118_v23  ;;  %v131_v37 = vmul.f32 %v124_v30, %v116_v24 }
  0x9e   :  { %v128_v40 = vmul.f32 %v122_v12, %v120_v34  ;;  %v127_v41 = vmul.f32 %v122_v12, %v119_v35  ;;  %v571_v42 = vsel %vm142_vm1, %v133_v36, -inf  ;;  %v574_v43 = vsel %vm142_vm1, %v131_v37, -inf }
  0x9f   :  { %156 = vmax.xlane.f32.xlu1 %v571_v42  ;;  %152 = vmax.xlane.f32.xlu0 %v574_v43  ;;  %v113_v44 = vpop.permute.xlu0 %112 }
  0xa0   :  { %v121_v45 = vsub.f32 %v113_v44, %v72_v38  ;;  %v135_v46 = vmul.f32 %v128_v40, %v120_v34  ;;  %v134_v50 = vmul.f32 %v127_v41, %v119_v35 }
  0xa2   :  { %v129_v47 = vmul.f32 %v122_v12, %v121_v45  ;;  %v579_v48 = vsel %vm142_vm1, %v135_v46, -inf  ;;  %v587_v51 = vsel %vm142_vm1, %v134_v50, -inf  ;;  %v74_v46 = vld [vmem:[#allocation6 + $0x8] sm:$0xff] }
  0xa3   :  { %160 = vmax.xlane.f32.xlu1 %v579_v48  ;;  %154 = vmax.xlane.f32.xlu0 %v582_v49 }
  0xa4   :  { %v136_v52 = vmul.f32 %v129_v47, %v121_v45 }
  0xa6   :  { %v591_v53 = vsel %vm142_vm1, %v136_v52, -inf  ;;  %v75_v52 = vld [vmem:[#allocation6 + $0x10] sm:$0xff] }
  0xa7   :  { %158 = vmax.xlane.f32.xlu0 %v587_v51 }
  0xab   :  { %162 = vmax.xlane.f32.xlu0 %v591_v53 }
 0x128   :  { %v151_v56 = vpop.xlane.xlu1 %150 }
 0x129   :  { %v611_v57 = vmax.f32 %v608_v55, %v151_v56  ;;  %v78_v56 = vld [vmem:[#allocation6 + $0x28] sm:$0xff] }
 0x12b   :  { %v178_v60 = vsub.f32 %v608_v55, %v611_v57  ;;  %347 = vst.msk [vmem:[#allocation2] sm:$0xff] %vm36_vm0, %v611_v57  ;;  %201 = vperm.xlu1 %404, %v611_v57  }
 0x12c   :  { %v157_v61 = vpop.xlane.xlu1 %156  ;;  %v153_v62 = vpop.xlane.xlu0 %152 }
 0x12d   :  { %v623_v63 = vmax.f32 %v613_v58, %v157_v61  ;;  %v626_v0 = vmax.f32 %v615_v59, %v153_v62  ;;  %v77_v61 = vld [vmem:[#allocation6 + $0x20] sm:$0xff] }
 0x12f   :  { %v181_v3 = vsub.f32 %v613_v58, %v623_v63  ;;  %350 = vst.msk [vmem:[#allocation2 + $0x18] sm:$0xff] %vm36_vm0, %v623_v63  ;;  %v179_v4 = vsub.f32 %v615_v59, %v626_v0  ;;  %348 = vst.msk [vmem:[#allocation2 + $0x8] sm:$0xff] %vm36_vm0, %v626_v0  ;;  %206 = vperm.xlu0 %403, %v626_v0  }
 0x130   :  { %v161_v5 = vpop.xlane.xlu1 %160  ;;  %v155_v6 = vpop.xlane.xlu0 %154 }
 0x131   :  { %v642_v7 = vmax.f32 %v628_v1, %v161_v5  ;;  %v645_v8 = vmax.f32 %v630_v2, %v155_v6  ;;  %v79_v6 = vld [vmem:[#allocation6 + $0x30] sm:$0xff]  ;;  %v191_v55 = vmul.f32 1.442695, %v181_v3 }
 0x133   :  { %v183_v10 = vsub.f32 %v628_v1, %v642_v7  ;;  %352 = vst.msk [vmem:[#allocation2 + $0x28] sm:$0xff] %vm36_vm0, %v642_v7  ;;  %v180_v11 = vsub.f32 %v630_v2, %v645_v8  ;;  %349 = vst.msk [vmem:[#allocation2 + $0x10] sm:$0xff] %vm36_vm0, %v645_v8  ;;  %211 = vperm.xlu1 %404, %v645_v8  }
 0x134   :  { %v159_v12 = vpop.xlane.xlu0 %158 }
 0x135   :  { %v659_v13 = vmax.f32 %v647_v9, %v159_v12  ;;  %v195_v0 = vmul.f32 1.442695, %v183_v10 }
 0x137   :  { %v182_v15 = vsub.f32 %v647_v9, %v659_v13  ;;  %351 = vst.msk [vmem:[#allocation2 + $0x20] sm:$0xff] %vm36_vm0, %v659_v13  ;;  %221 = vperm.xlu0 %403, %v659_v13   ;;  %216 = vperm.xlu1 %404, %v623_v63   ;;  %v256_v9 = vld [vmem:[#allocation3 + $0x8] sm:$0xff]  ;;  %v257_v13 = vld [vmem:[#allocation3 + $0x10] sm:$0xff] }
 0x138   :  { %v163_v16 = vpop.xlane.xlu0 %162 }
 0x139   :  { %v670_v17 = vmax.f32 %v661_v14, %v163_v16  ;;  %v185_v16 = vmul.f32 1.442695, %v178_v60  ;;  %v255_v60 = vld [vmem:[#allocation3] sm:$0xff] }
 0x13b   :  { %v184_v18 = vsub.f32 %v661_v14, %v670_v17  ;;  %353 = vst.msk [vmem:[#allocation2 + $0x30] sm:$0xff] %vm36_vm0, %v670_v17  ;;  %231 = vperm.xlu0 %403, %v670_v17   ;;  %226 = vperm.xlu1 %404, %v642_v7   ;;  %v259_v7 = vld [vmem:[#allocation3 + $0x20] sm:$0xff] }
 0x13d   :  { %v197_v59 = vmul.f32 1.442695, %v184_v18 }
 0x1aa   :  { %v202_v19 = vpop.permute.xlu1 %201 }
 0x1ab   :  { %v234_v20 = vsub.f32 %v564_v31, %v202_v19  ;;  %v187_v19 = vmul.f32 1.442695, %v179_v4 }
 0x1ad   :  { %v241_v21 = vmul.f32 1.442695, %v234_v20  ;;  %v189_v20 = vmul.f32 1.442695, %v180_v11 }
 0x1ae   :  { %v207_v22 = vpop.permute.xlu0 %206 }
 0x1af   :  { %405 = vpow2.f32 %v241_v21  ;;  %v235_v23 = vsub.f32 %v574_v43, %v207_v22  ;;  %v193_v21 = vmul.f32 1.442695, %v182_v15  ;;  %v258_v22 = vld [vmem:[#allocation3 + $0x18] sm:$0xff] }
 0x1b1   :  { %v243_v24 = vmul.f32 1.442695, %v235_v23 }
 0x1b2   :  { %v212_v25 = vpop.permute.xlu1 %211 }
 0x1b3   :  { %407 = vpow2.f32 %v243_v24  ;;  %v236_v26 = vsub.f32 %v582_v49, %v212_v25  ;;  %v73_v49 = vld [vmem:[#allocation6] sm:$0xff] }
 0x1b5   :  { %v245_v27 = vmul.f32 1.442695, %v236_v26 }
 0x1b6   :  { %v222_v28 = vpop.permute.xlu0 %221  ;;  %v217_v29 = vpop.permute.xlu1 %216 }
 0x1b7   :  { %409 = vpow2.f32 %v245_v27  ;;  %v238_v30 = vsub.f32 %v587_v51, %v222_v28  ;;  %v237_v32 = vsub.f32 %v571_v42, %v217_v29  ;;  %v76_v51 = vld [vmem:[#allocation6 + $0x18] sm:$0xff]  ;;  %v261_v27 = vld [vmem:[#allocation3 + $0x30] sm:$0xff] }
 0x1b9   :  { %v406_v33 = vpop.eup %405  ;;  %v249_v31 = vmul.f32 1.442695, %v238_v30  ;;  %v247_v34 = vmul.f32 1.442695, %v237_v32  ;;  %v260_v32 = vld [vmem:[#allocation3 + $0x28] sm:$0xff] }
 0x1ba   :  { %v232_v35 = vpop.permute.xlu0 %231  ;;  %269 = vadd.xlane.f32.xlu1 %v406_v33  ;;  %v227_v36 = vpop.permute.xlu1 %226  ;;  %v312_v50 = vmul.f32 %v406_v33, %v73_v49 }
 0x1bb   :  { %411 = vpow2.f32 %v249_v31  ;;  %v240_v37 = vsub.f32 %v591_v53, %v232_v35  ;;  %v239_v38 = vsub.f32 %v579_v48, %v227_v36  ;;  %v299_v36 = vld [vmem:[#allocation4 + $0x8] sm:$0xff] }
 0x1bc   :  { %413 = vpow2.f32 %v247_v34 }
 0x1bd   :  { %v408_v39 = vpop.eup %407  ;;  %v253_v40 = vmul.f32 1.442695, %v240_v37  ;;  %v251_v41 = vmul.f32 1.442695, %v239_v38 }
 0x1be   :  { %271 = vadd.xlane.f32.xlu0 %v408_v39  ;;  %v313_v48 = vmul.f32 %v408_v39, %v74_v46  ;;  %v301_v46 = vld [vmem:[#allocation4 + $0x18] sm:$0xff] }
 0x1bf   :  { %415 = vpow2.f32 %v253_v40  ;;  %v298_v40 = vld [vmem:[#allocation4] sm:$0xff] }
 0x1c0   :  { %417 = vpow2.f32 %v251_v41 }
 0x1c1   :  { %v410_v43 = vpop.eup %409  ;;  %419 = vpow2.f32 %v185_v16 }
 0x1c2   :  { %273 = vadd.xlane.f32.xlu0 %v410_v43  ;;  %v314_v54 = vmul.f32 %v410_v43, %v75_v52  ;;  %421 = vpow2.f32 %v187_v19 }
 0x1c3   :  { %423 = vpow2.f32 %v189_v20 }
 0x1c4   :  { %425 = vpow2.f32 %v193_v21 }
 0x1c5   :  { %v412_v42 = vpop.eup %411  ;;  %427 = vpow2.f32 %v191_v55 }
 0x1c6   :  { %v414_v44 = vpop.eup %413  ;;  %277 = vadd.xlane.f32.xlu0 %v412_v42  ;;  %v316_v5 = vmul.f32 %v412_v42, %v77_v61  ;;  %429 = vpow2.f32 %v197_v59  ;;  %v303_v61 = vld [vmem:[#allocation4 + $0x28] sm:$0xff]  ;;  %v304_v59 = vld [vmem:[#allocation4 + $0x30] sm:$0xff] }
 0x1c7   :  { %275 = vadd.xlane.f32.xlu1 %v414_v44  ;;  %v315_v53 = vmul.f32 %v414_v44, %v76_v51  ;;  %431 = vpow2.f32 %v195_v0 }
 0x1c9   :  { %v416_v45 = vpop.eup %415 }
 0x1ca   :  { %v418_v47 = vpop.eup %417  ;;  %281 = vadd.xlane.f32.xlu0 %v416_v45  ;;  %v318_v12 = vmul.f32 %v416_v45, %v79_v6  ;;  %v302_v6 = vld [vmem:[#allocation4 + $0x20] sm:$0xff] }
 0x1cb   :  { %279 = vadd.xlane.f32.xlu1 %v418_v47  ;;  %v317_v62 = vmul.f32 %v418_v47, %v78_v56  ;;  %v420_v57 = vpop.eup %419 }
 0x1cc   :  { %v262_v2 = vmul.f32 %v420_v57, %v255_v60  ;;  %v422_v4 = vpop.eup %421  ;;  %v305_v45 = vmul.f32 %v420_v57, %v298_v40 }
 0x1cd   :  { %v263_v58 = vmul.f32 %v422_v4, %v256_v9  ;;  %v424_v63 = vpop.eup %423  ;;  %v306_v42 = vmul.f32 %v422_v4, %v299_v36 }
 0x1ce   :  { %321 = vadd.xlane.f32.xlu0 %v313_v48  ;;  %v264_v15 = vmul.f32 %v424_v63, %v257_v13  ;;  %v426_v17 = vpop.eup %425  ;;  %v300_v48 = vld [vmem:[#allocation4 + $0x10] sm:$0xff] }
 0x1cf   :  { %319 = vadd.xlane.f32.xlu1 %v312_v50  ;;  %v428_v10 = vpop.eup %427  ;;  %v266_v23 = vmul.f32 %v426_v17, %v259_v7  ;;  %v307_v56 = vmul.f32 %v424_v63, %v300_v48  ;;  %v309_v55 = vmul.f32 %v426_v17, %v302_v6 }
 0x1d0   :  { %v709_v24 = vpop.eup %429  ;;  %v265_v26 = vmul.f32 %v428_v10, %v258_v22 }
 0x1d1   :  { %v432_v28 = vpop.eup %431  ;;  %v268_v31 = vmul.f32 %v709_v24, %v261_v27 }
 0x1d2   :  { %325 = vadd.xlane.f32.xlu0 %v315_v53  ;;  %v267_v35 = vmul.f32 %v432_v28, %v260_v32  ;;  %v308_v53 = vmul.f32 %v428_v10, %v301_v46  ;;  %v310_v20 = vmul.f32 %v432_v28, %v303_v61 }
 0x1d3   :  { %323 = vadd.xlane.f32.xlu1 %v314_v54 }
 0x1d6   :  { %329 = vadd.xlane.f32.xlu0 %v317_v62 }
 0x1d7   :  { %327 = vadd.xlane.f32.xlu1 %v316_v5 }
 0x1db   :  { %331 = vadd.xlane.f32.xlu1 %v318_v12 }
 0x247   :  { %v270_v8 = vpop.xlane.xlu1 %269 }
 0x248   :  { %v283_v11 = vadd.f32 %v270_v8, %v262_v2 }
 0x24a   :  { %291 = vst.msk [vmem:[#allocation3] sm:$0xff] %vm36_vm0, %v283_v11 }
 0x24b   :  { %v272_v3 = vpop.xlane.xlu0 %271 }
 0x24c   :  { %v284_v14 = vadd.f32 %v272_v3, %v263_v58  ;;  %v311_v3 = vmul.f32 %v709_v24, %v304_v59 }
 0x24e   :  { %292 = vst.msk [vmem:[#allocation3 + $0x8] sm:$0xff] %vm36_vm0, %v284_v14 }
 0x24f   :  { %v274_v1 = vpop.xlane.xlu0 %273 }
 0x250   :  { %v285_v18 = vadd.f32 %v274_v1, %v264_v15 }
 0x251   :  { %v364_v41 = vld [vmem:[#allocation3] sm:$0xff] }
 0x252   :  { %293 = vst.msk [vmem:[#allocation3 + $0x10] sm:$0xff] %vm36_vm0, %v285_v18 }
 0x253   :  { %v278_v25 = vpop.xlane.xlu0 %277 }
 0x254   :  { %v287_v29 = vadd.f32 %v278_v25, %v266_v23  ;;  %v276_v30 = vpop.xlane.xlu1 %275 }
 0x255   :  { %v286_v33 = vadd.f32 %v276_v30, %v265_v26  ;;  %v365_v37 = vld [vmem:[#allocation3 + $0x8] sm:$0xff] }
 0x256   :  { %295 = vst.msk [vmem:[#allocation3 + $0x20] sm:$0xff] %vm36_vm0, %v287_v29  ;;  %433 = vrcp.f32 %v365_v37 }
 0x257   :  { %294 = vst.msk [vmem:[#allocation3 + $0x18] sm:$0xff] %vm36_vm0, %v286_v33  ;;  %v282_v34 = vpop.xlane.xlu0 %281  ;;  %435 = vrcp.f32 %v364_v41 }
 0x258   :  { %v289_v38 = vadd.f32 %v282_v34, %v268_v31  ;;  %v280_v39 = vpop.xlane.xlu1 %279 }
 0x259   :  { %v288_v43 = vadd.f32 %v280_v39, %v267_v35  ;;  %v366_v50 = vld [vmem:[#allocation3 + $0x10] sm:$0xff] }
 0x25a   :  { %297 = vst.msk [vmem:[#allocation3 + $0x30] sm:$0xff] %vm36_vm0, %v289_v38 }
 0x25b   :  { %296 = vst.msk [vmem:[#allocation3 + $0x28] sm:$0xff] %vm36_vm0, %v288_v43  ;;  %v322_v44 = vpop.xlane.xlu0 %321 }
 0x25c   :  { %v334_v47 = vadd.f32 %v322_v44, %v306_v42  ;;  %v320_v49 = vpop.xlane.xlu1 %319 }
 0x25d   :  { %v333_v51 = vadd.f32 %v320_v49, %v305_v45  ;;  %v368_v12 = vld [vmem:[#allocation3 + $0x20] sm:$0xff] }
 0x25e   :  { %v367_v52 = vld [vmem:[#allocation3 + $0x18] sm:$0xff]  ;;  %341 = vst.msk [vmem:[#allocation4 + $0x8] sm:$0xff] %vm36_vm0, %v334_v47 }
 0x25f   :  { %437 = vrcp.f32 %v367_v52  ;;  %340 = vst.msk [vmem:[#allocation4] sm:$0xff] %vm36_vm0, %v333_v51  ;;  %v326_v54 = vpop.xlane.xlu0 %325 }
 0x260   :  { %439 = vrcp.f32 %v366_v50  ;;  %v336_v62 = vadd.f32 %v326_v54, %v308_v53  ;;  %v324_v5 = vpop.xlane.xlu1 %323  ;;  %v434_v0 = vpop.eup %433 }
 0x261   :  { %v335_v16 = vadd.f32 %v324_v5, %v307_v56  ;;  %v370_v2 = vld [vmem:[#allocation3 + $0x30] sm:$0xff]  ;;  %v436_v9 = vpop.eup %435 }
 0x262   :  { %v369_v19 = vld [vmem:[#allocation3 + $0x28] sm:$0xff]  ;;  %343 = vst.msk [vmem:[#allocation4 + $0x18] sm:$0xff] %vm36_vm0, %v336_v62 }
 0x263   :  { %441 = vrcp.f32 %v369_v19  ;;  %342 = vst.msk [vmem:[#allocation4 + $0x10] sm:$0xff] %vm36_vm0, %v335_v16  ;;  %v330_v21 = vpop.xlane.xlu0 %329 }
 0x264   :  { %443 = vrcp.f32 %v368_v12  ;;  %v338_v57 = vadd.f32 %v330_v21, %v310_v20  ;;  %v328_v60 = vpop.xlane.xlu1 %327 }
 0x265   :  { %v358_v4 = vld [vmem:[#allocation4 + $0x8] sm:$0xff]  ;;  %v337_v8 = vadd.f32 %v328_v60, %v309_v55  ;;  %445 = vrcp.f32 %v370_v2 }
 0x266   :  { %v374_v11 = vmul.f32 %v434_v0, %v358_v4  ;;  %v357_v58 = vld [vmem:[#allocation4] sm:$0xff]  ;;  %345 = vst.msk [vmem:[#allocation4 + $0x28] sm:$0xff] %vm36_vm0, %v338_v57 }
 0x267   :  { %v372_v63 = vmul.f32 %v436_v9, %v357_v58  ;;  %344 = vst.msk [vmem:[#allocation4 + $0x20] sm:$0xff] %vm36_vm0, %v337_v8 }
 0x268   :  { %386 = vst.msk [vmem:[%s756_s4 + $0x8] sm:$0xff] %vm36_vm0, %v374_v11  ;;  %v332_v13 = vpop.xlane.xlu1 %331 }
 0x269   :  { %v438_v14 = vpop.eup %437  ;;  %385 = vst.msk [vmem:[%s756_s4] sm:$0xff] %vm36_vm0, %v372_v63  ;;  %v360_v15 = vld [vmem:[#allocation4 + $0x18] sm:$0xff]  ;;  %v339_v17 = vadd.f32 %v332_v13, %v311_v3 }
 0x26a   :  { %v440_v1 = vpop.eup %439  ;;  %v378_v7 = vmul.f32 %v438_v14, %v360_v15  ;;  %v359_v10 = vld [vmem:[#allocation4 + $0x10] sm:$0xff] }
 0x26b   :  { %v376_v18 = vmul.f32 %v440_v1, %v359_v10  ;;  %346 = vst.msk [vmem:[#allocation4 + $0x30] sm:$0xff] %vm36_vm0, %v339_v17 }
 0x26c   :  { %388 = vst.msk [vmem:[%s756_s4 + $0x18] sm:$0xff] %vm36_vm0, %v378_v7 }
 0x26d   :  { %v442_v22 = vpop.eup %441  ;;  %387 = vst.msk [vmem:[%s756_s4 + $0x10] sm:$0xff] %vm36_vm0, %v376_v18  ;;  %v362_v23 = vld [vmem:[#allocation4 + $0x28] sm:$0xff] }
 0x26e   :  { %v444_v24 = vpop.eup %443  ;;  %v382_v25 = vmul.f32 %v442_v22, %v362_v23  ;;  %v361_v26 = vld [vmem:[#allocation4 + $0x20] sm:$0xff] }
 0x26f   :  { %v380_v27 = vmul.f32 %v444_v24, %v361_v26  ;;  %v446_v28 = vpop.eup %445 }
 0x270   :  { %390 = vst.msk [vmem:[%s756_s4 + $0x28] sm:$0xff] %vm36_vm0, %v382_v25 }
 0x271   :  { %389 = vst.msk [vmem:[%s756_s4 + $0x20] sm:$0xff] %vm36_vm0, %v380_v27 }
 0x272   :  { %v363_v29 = vld [vmem:[#allocation4 + $0x30] sm:$0xff] }
 0x273   :  { %v384_v30 = vmul.f32 %v446_v28, %v363_v29 }
 0x275   :  { %391 = vst.msk [vmem:[%s756_s4 + $0x30] sm:$0xff] %vm36_vm0, %v384_v30 }
 0x276   :  { %396 = vsyncpa [#allocation7], 1 }

</bundles_post_ra>
